<compile_context>
chip_gen: v6e
topology: v6e:2x2x1
jax: 0.10.0
libtpu: 0.0.40
codegen_flags: <defaults>
</compile_context>

<pallas_src>
import jax
import jax.numpy as jnp
from jax.experimental import pallas as pl
from jax.experimental.pallas import tpu as pltpu

BN_EPS = 1e-5
LANE = 128                          # channel padding unit (TPU lane width)
VMEM_LIMIT = 32 * 1024 * 1024       # safe scoped-VMEM budget on v5e/v6e/v7x
MM_BUDGET = 8 * 1024 * 1024         # single-step matmul working-set budget


def _make_divisible(v, divisor, min_value=None):
    if min_value is None:
        min_value = divisor
    new_v = max(min_value, int(v + divisor / 2) // divisor * divisor)
    if new_v < 0.9 * v:
        new_v += divisor
    return new_v


def _round_up(x, m):
    return ((x + m - 1) // m) * m


def _pad_to(a, shape):
    return jnp.pad(a, [(0, s - d) for d, s in zip(a.shape, shape)])


# --------------------------------------------------------------------------
# Pallas kernels
# --------------------------------------------------------------------------

def _make_matmul_kernel(relu6: bool):
    """o = [relu6]((x @ w) * scale + shift), bf16 MXU inputs, f32 accumulate."""
    def kernel(x_ref, w_ref, s_ref, b_ref, o_ref):
        y = jnp.dot(x_ref[...], w_ref[...], preferred_element_type=jnp.float32)
        y = y * s_ref[...] + b_ref[...]
        if relu6:
            y = jnp.clip(y, 0.0, 6.0)
        o_ref[...] = y.astype(o_ref.dtype)
    return kernel


def matmul_bn_act(x2d, w, scale, shift, *, relu6=False, out_dtype=jnp.bfloat16):
    """(M,K) @ (K,N) with folded-BN affine epilogue and optional ReLU6.

    Single grid step when the whole problem fits a VMEM budget (true for all
    layers at the test size), otherwise 256/128 tiles with the N-tile axis
    outermost so the (K,TN) weight block is reused across all M tiles.
    """
    M, Kx = x2d.shape
    Kw, N = w.shape
    Kp = _round_up(max(Kx, Kw), LANE)
    Np = _round_up(N, LANE)
    Mp = _round_up(max(M, 16), 16)          # 16-row min: bf16 sublane packing

    if 2 * (Mp * Kp + Kp * Np + Mp * Np) <= MM_BUDGET:
        TM, TN = Mp, Np                     # whole problem: one grid step
    else:
        TN = 256 if Np % 256 == 0 else LANE
        TM = 256
        Mp = _round_up(Mp, TM)

    xp = x2d
    if xp.shape != (Mp, Kp):
        xp = jnp.pad(xp, ((0, Mp - M), (0, Kp - Kx)))
    xp = xp.astype(jnp.bfloat16)
    wp = w
    if wp.shape != (Kp, Np):
        wp = jnp.pad(wp, ((0, Kp - Kw), (0, Np - N)))
    wp = wp.astype(jnp.bfloat16)

    def _vec(v):
        v2 = v.reshape(1, -1).astype(jnp.float32)
        if v2.shape[1] != Np:
            v2 = jnp.pad(v2, ((0, 0), (0, Np - v2.shape[1])))
        return v2

    sp, bp = _vec(scale), _vec(shift)

    out = pl.pallas_call(
        _make_matmul_kernel(relu6),
        grid=(Np // TN, Mp // TM),          # N tiles outer -> weight-stationary
        in_specs=[
            pl.BlockSpec((TM, Kp), lambda j, i: (i, 0)),
            pl.BlockSpec((Kp, TN), lambda j, i: (0, j)),
            pl.BlockSpec((1, TN), lambda j, i: (0, j)),
            pl.BlockSpec((1, TN), lambda j, i: (0, j)),
        ],
        out_specs=pl.BlockSpec((TM, TN), lambda j, i: (i, j)),
        out_shape=jax.ShapeDtypeStruct((Mp, Np), out_dtype),
        compiler_params=pltpu.CompilerParams(
            dimension_semantics=("parallel", "parallel"),
            vmem_limit_bytes=VMEM_LIMIT),
    )(xp, wp, sp, bp)
    if Mp != M:
        out = out[:M]
    return out                              # columns stay lane-padded


def _make_fused_block_kernel(H, W, has_expand, use_res):
    """Fused stride-1 inverted residual: expand -> 3x3 dw -> project (+res)."""
    HW = H * W

    def kernel(*refs):
        if has_expand:
            (x_ref, we_ref, es_ref, eb_ref, wd_ref, ds_ref, db_ref,
             wp_ref, ps_ref, pb_ref, o_ref, hpad_ref) = refs
        else:
            (x_ref, wd_ref, ds_ref, db_ref,
             wp_ref, ps_ref, pb_ref, o_ref, hpad_ref) = refs

        x2 = x_ref[...].reshape(HW, x_ref.shape[-1])           # (HW, Cin) bf16

        # --- expand: 1x1 conv + BN + ReLU6 (MXU) -------------------------
        if has_expand:
            hid = jnp.dot(x2, we_ref[...], preferred_element_type=jnp.float32)
            hid = jnp.clip(hid * es_ref[...] + eb_ref[...], 0.0, 6.0)
            hid = hid.astype(jnp.bfloat16)
        else:
            hid = x2
        Hd = hid.shape[-1]

        # --- 3x3 depthwise + BN + ReLU6, hidden resident in VMEM scratch --
        hpad_ref[...] = jnp.zeros(hpad_ref.shape, hpad_ref.dtype)
        hpad_ref[1:H + 1, 1:W + 1, :] = hid.reshape(H, W, Hd)
        wd = wd_ref[...]                                       # (9, Hd) f32
        acc = None
        for i in range(3):
            for j in range(3):
                tap = hpad_ref[i:i + H, j:j + W, :].astype(jnp.float32)
                contrib = tap * wd[3 * i + j:3 * i + j + 1, :]
                acc = contrib if acc is None else acc + contrib
        y = jnp.clip(acc * ds_ref[...] + db_ref[...], 0.0, 6.0)
        dw2 = y.reshape(HW, Hd).astype(jnp.bfloat16)

        # --- project: 1x1 conv + BN (+ residual) (MXU) --------------------
        out = jnp.dot(dw2, wp_ref[...], preferred_element_type=jnp.float32)
        out = out * ps_ref[...] + pb_ref[...]
        if use_res:
            out = out + x2.astype(jnp.float32)
        o_ref[...] = out.reshape(H, W, out.shape[-1]).astype(o_ref.dtype)

    return kernel


def fused_inverted_residual_s1(x, blk):
    """Whole stride-1 inverted residual block as ONE pallas_call, grid=(N,)."""
    N, H, W, Cin_p = x.shape
    e, d, p = blk['expand'], blk['dw'], blk['project']
    Hid_p = d['w'].shape[1]
    Cout_p = p['w'].shape[1]
    has_expand = e is not None

    def _full(shape):
        return pl.BlockSpec(shape, lambda n: (0, 0))

    args = [x]
    in_specs = [pl.BlockSpec((None, H, W, Cin_p), lambda n: (n, 0, 0, 0))]
    if has_expand:
        args += [e['w'], e['scale'], e['shift']]
        in_specs += [_full((Cin_p, Hid_p)), _full((1, Hid_p)), _full((1, Hid_p))]
    args += [d['w'], d['scale'], d['shift'], p['w'], p['scale'], p['shift']]
    in_specs += [_full((9, Hid_p)), _full((1, Hid_p)), _full((1, Hid_p)),
                 _full((Hid_p, Cout_p)), _full((1, Cout_p)), _full((1, Cout_p))]

    return pl.pallas_call(
        _make_fused_block_kernel(H, W, has_expand, blk['use_res']),
        grid=(N,),
        in_specs=in_specs,
        out_specs=pl.BlockSpec((None, H, W, Cout_p), lambda n: (n, 0, 0, 0)),
        out_shape=jax.ShapeDtypeStruct((N, H, W, Cout_p), jnp.bfloat16),
        scratch_shapes=[pltpu.VMEM((H + 2, W + 2, Hid_p), jnp.bfloat16)],
        compiler_params=pltpu.CompilerParams(
            dimension_semantics=("parallel",),
            vmem_limit_bytes=VMEM_LIMIT),
    )(*args)


def _make_dw_s2_kernel(Ho, Wo):
    """3x3 depthwise conv, stride 2, on even/odd phase-split inputs + BN + ReLU6."""
    def kernel(ee_ref, eo_ref, oe_ref, oo_ref, w_ref, s_ref, b_ref, o_ref):
        w = w_ref[...]                                          # (9, C) f32

        def tap(ref, a, b):
            return ref[a:a + Ho, b:b + Wo, :].astype(jnp.float32)

        # out[h,w] = sum_{i,j} xpad[2h+i, 2w+j] * k[i,j]
        acc = (tap(ee_ref, 0, 0) * w[0:1, :] + tap(eo_ref, 0, 0) * w[1:2, :]
               + tap(ee_ref, 0, 1) * w[2:3, :]
               + tap(oe_ref, 0, 0) * w[3:4, :] + tap(oo_ref, 0, 0) * w[4:5, :]
               + tap(oe_ref, 0, 1) * w[5:6, :]
               + tap(ee_ref, 1, 0) * w[6:7, :] + tap(eo_ref, 1, 0) * w[7:8, :]
               + tap(ee_ref, 1, 1) * w[8:9, :])
        y = jnp.clip(acc * s_ref[...] + b_ref[...], 0.0, 6.0)
        o_ref[...] = y.astype(o_ref.dtype)
    return kernel


def depthwise_s2_conv_bn_relu6(x, w9, scale, shift):
    """3x3 depthwise conv, stride=2, padding=1, + BN + ReLU6.

    The wrapper splits the zero-padded input into even/odd row/col phases with
    cheap XLA strided slices, so every in-kernel read is a contiguous static
    slice (no strided Ref indexing).  Grid over batch, full channels per step.
    """
    N, H, W, Cp = x.shape
    Ho = (H - 1) // 2 + 1
    Wo = (W - 1) // 2 + 1
    xp = jnp.pad(x, ((0, 0), (1, 1), (1, 1), (0, 0)))
    ee = xp[:, 0:2 * Ho + 1:2, 0:2 * Wo + 1:2, :]   # (N, Ho+1, Wo+1, C)
    eo = xp[:, 0:2 * Ho + 1:2, 1:2 * Wo:2, :]       # (N, Ho+1, Wo,   C)
    oe = xp[:, 1:2 * Ho:2, 0:2 * Wo + 1:2, :]       # (N, Ho,   Wo+1, C)
    oo = xp[:, 1:2 * Ho:2, 1:2 * Wo:2, :]           # (N, Ho,   Wo,   C)

    def _phase_spec(h, w_):
        return pl.BlockSpec((None, h, w_, Cp), lambda n: (n, 0, 0, 0))

    return pl.pallas_call(
        _make_dw_s2_kernel(Ho, Wo),
        grid=(N,),
        in_specs=[_phase_spec(Ho + 1, Wo + 1), _phase_spec(Ho + 1, Wo),
                  _phase_spec(Ho, Wo + 1), _phase_spec(Ho, Wo),
                  pl.BlockSpec((9, Cp), lambda n: (0, 0)),
                  pl.BlockSpec((1, Cp), lambda n: (0, 0)),
                  pl.BlockSpec((1, Cp), lambda n: (0, 0))],
        out_specs=pl.BlockSpec((None, Ho, Wo, Cp), lambda n: (n, 0, 0, 0)),
        out_shape=jax.ShapeDtypeStruct((N, Ho, Wo, Cp), jnp.bfloat16),
        compiler_params=pltpu.CompilerParams(
            dimension_semantics=("parallel",),
            vmem_limit_bytes=VMEM_LIMIT),
    )(ee, eo, oe, oo, w9, scale, shift)


def _head_kernel(x_ref, wl_ref, ls_ref, lb_ref, wf_ref, fb_ref, o_ref):
    """last 1x1 ConvBNReLU6 + AdaptiveAvgPool2d(1,1) + flatten + Linear."""
    h = jnp.dot(x_ref[...], wl_ref[...], preferred_element_type=jnp.float32)
    h = jnp.clip(h * ls_ref[...] + lb_ref[...], 0.0, 6.0)
    pooled = jnp.mean(h, axis=0, keepdims=True)                 # (1, Lp)
    # TODO(synk): nn.Dropout(0.2) is identity in eval mode.
    logits = jnp.dot(pooled.astype(jnp.bfloat16), wf_ref[...],
                     preferred_element_type=jnp.float32) + fb_ref[...]
    o_ref[...] = logits


def head_conv_pool_fc(x, last_p, fc_p):
    N, H, W, Cp = x.shape
    HW = H * W
    x3 = x.reshape(N, HW, Cp)
    Lp = last_p['w'].shape[1]
    NCp = fc_p['w'].shape[1]
    return pl.pallas_call(
        _head_kernel,
        grid=(N,),
        in_specs=[pl.BlockSpec((None, HW, Cp), lambda n: (n, 0, 0)),
                  pl.BlockSpec((Cp, Lp), lambda n: (0, 0)),
                  pl.BlockSpec((1, Lp), lambda n: (0, 0)),
                  pl.BlockSpec((1, Lp), lambda n: (0, 0)),
                  pl.BlockSpec((Lp, NCp), lambda n: (0, 0)),
                  pl.BlockSpec((1, NCp), lambda n: (0, 0))],
        out_specs=pl.BlockSpec((1, NCp), lambda n: (n, 0)),
        out_shape=jax.ShapeDtypeStruct((N, NCp), jnp.float32),
        compiler_params=pltpu.CompilerParams(
            dimension_semantics=("parallel",),
            vmem_limit_bytes=VMEM_LIMIT),
    )(x3, last_p['w'], last_p['scale'], last_p['shift'], fc_p['w'], fc_p['b'])


# --------------------------------------------------------------------------
# Layer wrappers (glue: reshapes / im2col; channels remain padded)
# --------------------------------------------------------------------------

def pointwise_conv_bn(x, w, scale, shift, *, relu6):
    """1x1 conv + BN (+ReLU6).  x: (N,H,W,Cinp), w: (Cinp,Coutp)."""
    N, H, W, C = x.shape
    y2 = matmul_bn_act(x.reshape(N * H * W, C), w, scale, shift, relu6=relu6)
    return y2.reshape(N, H, W, y2.shape[-1])


def stem_conv_bn_relu6(x, w, scale, shift):
    """3x3 conv, stride=2, padding=1, groups=1, via im2col + Pallas matmul."""
    N, H, W, Cin = x.shape
    Ho = (H - 1) // 2 + 1
    Wo = (W - 1) // 2 + 1
    xp = jnp.pad(x, ((0, 0), (1, 1), (1, 1), (0, 0)))
    cols = []
    for kh in range(3):
        for kw in range(3):
            cols.append(xp[:, kh:kh + 2 * (Ho - 1) + 1:2,
                           kw:kw + 2 * (Wo - 1) + 1:2, :])
    patches = jnp.concatenate(cols, axis=-1)            # (N,Ho,Wo,27) in (kh,kw,cin) order
    y = matmul_bn_act(patches.reshape(N * Ho * Wo, 9 * Cin), w, scale, shift,
                      relu6=True)
    return y.reshape(N, Ho, Wo, y.shape[-1])


# --------------------------------------------------------------------------
# Parameter construction (deterministic synthetic init; pre-padded to 128)
# --------------------------------------------------------------------------

def _bn_affine_padded(c, cp):
    # Eval-mode BN folded to scale/shift.  Synthetic init (gamma=1, beta=0,
    # mean=0, var=1): scale = 1/sqrt(1+eps), shift = 0.  General checkpoints:
    # scale = gamma/sqrt(var+eps), shift = beta - mean*scale.
    scale = jnp.full((1, c), (1.0 + BN_EPS) ** -0.5, jnp.float32)
    scale = jnp.pad(scale, ((0, 0), (0, cp - c)))
    shift = jnp.zeros((1, cp), jnp.float32)
    return scale, shift


def init_mobilenet_v2_params(key, num_classes=1000, scale=1.0, round_nearest=8):
    cfg = [[1, 16, 1, 1], [6, 24, 2, 2], [6, 32, 3, 2], [6, 64, 4, 2],
           [6, 96, 3, 1], [6, 160, 3, 2], [6, 320, 1, 1]]
    input_channel = _make_divisible(32 * scale, round_nearest)
    last_channel = _make_divisible(1280 * max(1.0, scale), round_nearest)
    kit = iter(jax.random.split(key, 256))
    params = {'num_classes': num_classes}

    # stem: Conv2d(3, input_channel, 3, stride=2, pad=1, bias=False), kaiming fan_out
    c0 = input_channel
    c0p = _round_up(c0, LANE)
    std = (2.0 / (c0 * 9)) ** 0.5
    w = std * jax.random.normal(next(kit), (3, 3, 3, c0), jnp.float32)
    sc, sh = _bn_affine_padded(c0, c0p)
    params['stem'] = {
        'w': _pad_to(w.reshape(27, c0), (LANE, c0p)).astype(jnp.bfloat16),
        'scale': sc, 'shift': sh,
    }

    blocks = []
    in_c = input_channel
    for t, c, n, s in cfg:
        out_c = _make_divisible(c * scale, round_nearest)
        for i in range(n):
            stride = s if i == 0 else 1
            hidden = int(round(in_c * t))
            in_cp = _round_up(in_c, LANE)
            hid_p = _round_up(hidden, LANE)
            out_cp = _round_up(out_c, LANE)
            blk = {'stride': stride, 'use_res': (stride == 1 and in_c == out_c)}
            if t != 1:
                std_e = (2.0 / hidden) ** 0.5
                we = std_e * jax.random.normal(next(kit), (in_c, hidden), jnp.float32)
                esc, esh = _bn_affine_padded(hidden, hid_p)
                blk['expand'] = {
                    'w': _pad_to(we, (in_cp, hid_p)).astype(jnp.bfloat16),
                    'scale': esc, 'shift': esh,
                }
            else:
                blk['expand'] = None
            std_d = (2.0 / (hidden * 9)) ** 0.5
            wd = std_d * jax.random.normal(next(kit), (9, hidden), jnp.float32)
            dsc, dsh = _bn_affine_padded(hidden, hid_p)
            blk['dw'] = {'w': _pad_to(wd, (9, hid_p)), 'scale': dsc, 'shift': dsh}
            std_p = (2.0 / out_c) ** 0.5
            wp_ = std_p * jax.random.normal(next(kit), (hidden, out_c), jnp.float32)
            psc, psh = _bn_affine_padded(out_c, out_cp)
            blk['project'] = {
                'w': _pad_to(wp_, (hid_p, out_cp)).astype(jnp.bfloat16),
                'scale': psc, 'shift': psh,
            }
            blocks.append(blk)
            in_c = out_c
    params['blocks'] = blocks

    in_cp = _round_up(in_c, LANE)
    lcp = _round_up(last_channel, LANE)
    std_l = (2.0 / last_channel) ** 0.5
    wl = std_l * jax.random.normal(next(kit), (in_c, last_channel), jnp.float32)
    lsc, lsh = _bn_affine_padded(last_channel, lcp)
    params['last'] = {
        'w': _pad_to(wl, (in_cp, lcp)).astype(jnp.bfloat16),
        'scale': lsc, 'shift': lsh,
    }
    ncp = _round_up(num_classes, LANE)
    wf = 0.001 * jax.random.normal(next(kit), (last_channel, num_classes), jnp.float32)
    params['fc'] = {
        'w': _pad_to(wf, (lcp, ncp)).astype(jnp.bfloat16),
        'b': jnp.zeros((1, ncp), jnp.float32),      # Linear bias (init to 0)
    }
    return params


# --------------------------------------------------------------------------
# Forward pass (matches MobileNetV2._forward_impl, eval-mode BN/dropout)
# --------------------------------------------------------------------------

def mobilenet_v2_forward(params, x_nchw):
    x = jnp.transpose(x_nchw, (0, 2, 3, 1)).astype(jnp.bfloat16)   # NCHW -> NHWC

    p = params['stem']
    x = stem_conv_bn_relu6(x, p['w'], p['scale'], p['shift'])

    for blk in params['blocks']:
        if blk['stride'] == 1:
            # expand -> dw -> project (+residual) fused into one kernel
            x = fused_inverted_residual_s1(x, blk)
        else:
            h = x
            if blk['expand'] is not None:
                e = blk['expand']
                h = pointwise_conv_bn(h, e['w'], e['scale'], e['shift'], relu6=True)
            d = blk['dw']
            h = depthwise_s2_conv_bn_relu6(h, d['w'], d['scale'], d['shift'])
            pr = blk['project']
            x = pointwise_conv_bn(h, pr['w'], pr['scale'], pr['shift'], relu6=False)

    # last ConvBNReLU + avgpool + flatten + (dropout: identity) + Linear, fused
    logits = head_conv_pool_fc(x, params['last'], params['fc'])
    return logits[:, :params['num_classes']]


if __name__ == "__main__":
    key = jax.random.PRNGKey(0)
    pkey, xkey = jax.random.split(key)
    params = init_mobilenet_v2_params(pkey, num_classes=1000, scale=1.0)
    # NCHW input like the PyTorch module; 32x32 keeps all five stride-2 stages valid.
    x = jax.random.normal(xkey, (2, 3, 32, 32), dtype=jnp.float32)
    logits = mobilenet_v2_forward(params, x)
    logits = jax.block_until_ready(logits)
    assert logits.shape == (2, 1000), logits.shape
    assert bool(jnp.all(jnp.isfinite(logits)))
    print("KERNEL_OK")
</pallas_src>

<mosaic_0001>
module attributes {stable_mosaic.version = 11 : i64} {
  func.func @kernel(%arg0: i32, %arg1: i32, %arg2: memref<512x128xbf16, #tpu.memory_space<vmem>>, %arg3: memref<128x128xbf16, #tpu.memory_space<vmem>>, %arg4: memref<1x128xf32, #tpu.memory_space<vmem>>, %arg5: memref<1x128xf32, #tpu.memory_space<vmem>>, %arg6: memref<512x128xbf16, #tpu.memory_space<vmem>>) attributes {dimension_semantics = [#tpu.dimension_semantics<parallel>, #tpu.dimension_semantics<parallel>], iteration_bounds = array<i64: 1, 1>, scalar_prefetch = 0 : i64, scratch_operands = 0 : i64, tpu.core_type = #tpu.core_type<tc>, window_params = [{transform_indices = @transform_0, window_bounds = array<i64: 512, 128>}, {transform_indices = @transform_1, window_bounds = array<i64: 128, 128>}, {transform_indices = @transform_2, window_bounds = array<i64: 1, 128>}, {transform_indices = @transform_3, window_bounds = array<i64: 1, 128>}, {transform_indices = @transform_4, window_bounds = array<i64: 512, 128>}]} {
    %c0 = arith.constant 0 : index
    %c0_0 = arith.constant 0 : index
    %0 = vector.load %arg2[%c0, %c0_0] : memref<512x128xbf16, #tpu.memory_space<vmem>>, vector<512x128xbf16>
    %c0_1 = arith.constant 0 : index
    %c0_2 = arith.constant 0 : index
    %1 = vector.load %arg3[%c0_1, %c0_2] : memref<128x128xbf16, #tpu.memory_space<vmem>>, vector<128x128xbf16>
    %cst = arith.constant dense<0.000000e+00> : vector<512x128xf32>
    %2 = tpu.matmul %0, %1, %cst {dimension_numbers = #tpu.dot_dimension_numbers<[1], [0], [0], [1], [0, 0, 1, 1], [], []>} : vector<512x128xbf16>, vector<128x128xbf16>, vector<512x128xf32> -> vector<512x128xf32>
    %c0_3 = arith.constant 0 : index
    %c0_4 = arith.constant 0 : index
    %3 = vector.load %arg4[%c0_3, %c0_4] : memref<1x128xf32, #tpu.memory_space<vmem>>, vector<1x128xf32>
    %4 = vector.broadcast %3 : vector<1x128xf32> to vector<512x128xf32>
    %5 = arith.mulf %2, %4 : vector<512x128xf32>
    %c0_5 = arith.constant 0 : index
    %c0_6 = arith.constant 0 : index
    %6 = vector.load %arg5[%c0_5, %c0_6] : memref<1x128xf32, #tpu.memory_space<vmem>>, vector<1x128xf32>
    %7 = vector.broadcast %6 : vector<1x128xf32> to vector<512x128xf32>
    %8 = arith.addf %5, %7 : vector<512x128xf32>
    %cst_7 = arith.constant 0.000000e+00 : f32
    %cst_8 = arith.constant 6.000000e+00 : f32
    %9 = vector.broadcast %cst_7 : f32 to vector<512x128xf32>
    %10 = arith.maximumf %9, %8 : vector<512x128xf32>
    %11 = vector.broadcast %cst_8 : f32 to vector<512x128xf32>
    %12 = arith.minimumf %11, %10 : vector<512x128xf32>
    %13 = arith.truncf %12 : vector<512x128xf32> to vector<512x128xbf16>
    %c0_9 = arith.constant 0 : index
    %c0_10 = arith.constant 0 : index
    %14 = vector.load %arg6[%c0_9, %c0_10] : memref<512x128xbf16, #tpu.memory_space<vmem>>, vector<512x128xbf16>
    tpu.vector_store %arg6[%c0_9, %c0_10], %13 {strides = array<i32>} : memref<512x128xbf16, #tpu.memory_space<vmem>>, vector<512x128xbf16>,
    return
  }
  func.func @transform_0(%arg0: i32, %arg1: i32) -> (i32, i32) {
    %c0_i32 = arith.constant 0 : i32
    %c0_i32_0 = arith.constant 0 : i32
    return %arg1, %c0_i32 : i32, i32
  }
  func.func @transform_1(%arg0: i32, %arg1: i32) -> (i32, i32) {
    %c0_i32 = arith.constant 0 : i32
    %c0_i32_0 = arith.constant 0 : i32
    return %c0_i32, %arg0 : i32, i32
  }
  func.func @transform_2(%arg0: i32, %arg1: i32) -> (i32, i32) {
    %c0_i32 = arith.constant 0 : i32
    %c0_i32_0 = arith.constant 0 : i32
    return %c0_i32, %arg0 : i32, i32
  }
  func.func @transform_3(%arg0: i32, %arg1: i32) -> (i32, i32) {
    %c0_i32 = arith.constant 0 : i32
    %c0_i32_0 = arith.constant 0 : i32
    return %c0_i32, %arg0 : i32, i32
  }
  func.func @transform_4(%arg0: i32, %arg1: i32) -> (i32, i32) {
    %c0_i32 = arith.constant 0 : i32
    return %arg1, %arg0 : i32, i32
  }
}

</mosaic_0001>

<bundles_post_ra>
// kernel: tpu_custom_call.1
= control target key start
LH: loop header
LB: loop body
LE: loop exit
PB: predicated region body
PF: predicated region fallthrough
CT: control target
= control target key end

     0   :  { %9 = vsyncpa [#allocation3], 0  ;;  %s2058_s0 = inlined_call_operand.hbm [shape: bf16[512,128], index: 0, kind: input, shape index: {}]   ;;  %s2059_s1 = inlined_call_operand.hbm [shape: bf16[128,128], index: 1, kind: input, shape index: {}]   ;;  %s2060_s2 = inlined_call_operand.vmem [shape: f32[1,128], index: 2, kind: input, shape index: {}]   ;;  %s2061_s3 = inlined_call_operand.vmem [shape: f32[1,128], index: 3, kind: input, shape index: {}]   ;;  %s2062_s4 = inlined_call_operand.hbm [shape: bf16[512,128], index: 4, kind: output, shape index: {}]  }
   0x1   :  { %10 = vsyncpa [#allocation6], 0 }
   0x2   :  { %11 = vsyncpa [#allocation4], 0  ;;  %s1872_s15 = smov [#allocation2]  }
   0x3   :  { %s17_s16 = sshll.u32 %s1872_s15, 4  ;;  %s18_s16 = int_to_ptr.vmem [resolvable:$true] %s17_s16 }
   0x4   :  { %s1814_s17 = scalar_lea.vmem %s18_s16, 4096  ;;  %p1819_p1 = scmp.lt.s32.totalorder %s18_s16, %s18_s16 }
   0x5   :  { %p1815_p0 = scmp.ne.s32.totalorder %s18_s16, %s1814_s17  ;;  %p1820_p2 = scmp.lt.s32.totalorder %s1814_s17, %s1814_s17 }
   0x7   :  { %p1821_p3 = por %p1820_p2, %p1819_p1 }
   0x9   :  { %p1822_p4 = pnand %p1821_p3, %p1815_p0 }
   0xb   :  { %1825 = shalt.err (!%p1822_p4)
}
   0xc   :  { %s1873_s18 = smov 64   ;;  %s1874_s19 = smov 4  }
   0xd   :  { %23 = dma.hbm_to_vmem [thread:$0]  %s2058_s0, 4096, %s18_s16, [#allocation3], %s1873_s18, %s1873_s18, %s1874_s19  }
   0xe   :  { %s1875_s22 = smov [#allocation5]  }
   0xf   :  { %s29_s23 = sshll.u32 %s1875_s22, 4  ;;  %s30_s23 = int_to_ptr.vmem [resolvable:$true] %s29_s23 }
  0x10   :  { %s1834_s24 = scalar_lea.vmem %s30_s23, 1024  ;;  %p1839_p6 = scmp.lt.s32.totalorder %s30_s23, %s30_s23 }
  0x11   :  { %p1835_p5 = scmp.ne.s32.totalorder %s30_s23, %s1834_s24  ;;  %p1840_p7 = scmp.lt.s32.totalorder %s1834_s24, %s1834_s24 }
  0x13   :  { %p1841_p8 = por %p1840_p7, %p1839_p6 }
  0x15   :  { %p1842_p9 = pnand %p1841_p8, %p1835_p5 }
  0x17   :  { %1845 = shalt.err (!%p1842_p9)
}
  0x18   :  { %35 = dma.hbm_to_vmem [thread:$0]  %s2059_s1, 1024, %s30_s23, [#allocation6], %s1873_s18, %s1873_s18, %s1874_s19  }
  0x19   :  { %1866 = dma.done.wait [#allocation3], 4096  }
  0x1a   :  { %1867 = vsyncadd [#allocation3], 4294963200 }
  0x1b   :  { %1868 = dma.done.wait [#allocation6], 1024  }
  0x1c   :  { %1869 = vsyncadd [#allocation6], 4294966272  ;;  %v1766_v0 = vld [vmem:[#allocation5 + $0x38] sm:$0xff]   ;;  %v1767_v1 = vld [vmem:[#allocation5 + $0x30] sm:$0xff]  }
  0x1d   :  { %1665 = vmatprep.subr.bf16.mxu0 %v1766_v0  ;;  %1745 = vmatprep.subr.bf16.mxu1 %v1766_v0  ;;  %v1768_v2 = vld [vmem:[#allocation5 + $0x28] sm:$0xff]   ;;  %v1769_v3 = vld [vmem:[#allocation5 + $0x20] sm:$0xff]   ;;  %v1770_v6 = vld [vmem:[#allocation5 + $0x18] sm:$0xff]  }
  0x1e   :  { %1666 = vmatpush3.bf16.msra.mxu0 %v1766_v0  ;;  %1753 = vmatpush3.bf16.msra.mxu1 %v1766_v0  ;;  %v1774_v4 = vld [vmem:[#allocation2] sm:$0xff]   ;;  %v1771_v7 = vld [vmem:[#allocation5 + $0x10] sm:$0xff]   ;;  %v1772_v8 = vld [vmem:[#allocation5 + $0x8] sm:$0xff]  }
  0x1f   :  { %1667 = vmatprep.subr.bf16.mxu0 %v1767_v1  ;;  %1746 = vmatprep.subr.bf16.mxu1 %v1767_v1  ;;  %v1775_v5 = vld [vmem:[#allocation2 + $0x80] sm:$0xff]   ;;  %v1776_v10 = vld [vmem:[#allocation2 + $0x8] sm:$0xff]   ;;  %v1778_v12 = vld [vmem:[#allocation2 + $0x10] sm:$0xff]  }
  0x20   :  { %1681 = vmatprep.mubr.bf16.mxu0 %v1774_v4  ;;  %1713 = vmatprep.mubr.bf16.mxu1 %v1775_v5  ;;  %v1773_v9 = vld [vmem:[#allocation5] sm:$0xff]   ;;  %v1777_v11 = vld [vmem:[#allocation2 + $0x88] sm:$0xff]   ;;  %v1779_v13 = vld [vmem:[#allocation2 + $0x90] sm:$0xff]  }
  0x21   :  { %v1780_v14 = vld [vmem:[#allocation2 + $0x18] sm:$0xff]   ;;  %v1782_v16 = vld [vmem:[#allocation2 + $0x20] sm:$0xff]   ;;  %v1784_v18 = vld [vmem:[#allocation2 + $0x28] sm:$0xff]  }
  0x22   :  { %1668 = vmatpush3.bf16.msra.mxu0 %v1767_v1  ;;  %1754 = vmatpush3.bf16.msra.mxu1 %v1767_v1  ;;  %v1781_v15 = vld [vmem:[#allocation2 + $0x98] sm:$0xff]   ;;  %v1783_v17 = vld [vmem:[#allocation2 + $0xa0] sm:$0xff]   ;;  %v1785_v19 = vld [vmem:[#allocation2 + $0xa8] sm:$0xff]  }
  0x23   :  { %1669 = vmatprep.subr.bf16.mxu0 %v1768_v2  ;;  %1747 = vmatprep.subr.bf16.mxu1 %v1768_v2  ;;  %v1786_v20 = vld [vmem:[#allocation2 + $0x30] sm:$0xff]   ;;  %v1788_v22 = vld [vmem:[#allocation2 + $0x38] sm:$0xff]   ;;  %v1790_v24 = vld [vmem:[#allocation2 + $0x40] sm:$0xff]  }
  0x24   :  { %v1787_v21 = vld [vmem:[#allocation2 + $0xb0] sm:$0xff]   ;;  %v1789_v23 = vld [vmem:[#allocation2 + $0xb8] sm:$0xff]   ;;  %v1791_v25 = vld [vmem:[#allocation2 + $0xc0] sm:$0xff]  }
  0x25   :  { %v1792_v26 = vld [vmem:[#allocation2 + $0x48] sm:$0xff]   ;;  %v1794_v28 = vld [vmem:[#allocation2 + $0x50] sm:$0xff]   ;;  %v1796_v30 = vld [vmem:[#allocation2 + $0x58] sm:$0xff]  }
  0x26   :  { %1670 = vmatpush3.bf16.msra.mxu0 %v1768_v2  ;;  %1755 = vmatpush3.bf16.msra.mxu1 %v1768_v2  ;;  %v1793_v27 = vld [vmem:[#allocation2 + $0xc8] sm:$0xff]   ;;  %v1795_v29 = vld [vmem:[#allocation2 + $0xd0] sm:$0xff]   ;;  %v1797_v31 = vld [vmem:[#allocation2 + $0xd8] sm:$0xff]  }
  0x27   :  { %1671 = vmatprep.subr.bf16.mxu0 %v1769_v3  ;;  %1748 = vmatprep.subr.bf16.mxu1 %v1769_v3  ;;  %v1798_v32 = vld [vmem:[#allocation2 + $0x60] sm:$0xff]   ;;  %v1800_v34 = vld [vmem:[#allocation2 + $0x68] sm:$0xff]   ;;  %v1802_v36 = vld [vmem:[#allocation2 + $0x70] sm:$0xff]  }
  0x28   :  { %v1799_v33 = vld [vmem:[#allocation2 + $0xe0] sm:$0xff]   ;;  %v1801_v35 = vld [vmem:[#allocation2 + $0xe8] sm:$0xff]   ;;  %v1803_v37 = vld [vmem:[#allocation2 + $0xf0] sm:$0xff]  }
  0x29   :  { %v1804_v38 = vld [vmem:[#allocation2 + $0x78] sm:$0xff]   ;;  %v1917_v40 = vld [vmem:[%s2060_s2] ss:$0 sm:$0xff]  ;;  %s1876_s2 = smov [#allocation7]  }
  0x2a   :  { %1672 = vmatpush3.bf16.msra.mxu0 %v1769_v3  ;;  %1756 = vmatpush3.bf16.msra.mxu1 %v1769_v3  ;;  %v1805_v39 = vld [vmem:[#allocation2 + $0xf8] sm:$0xff]   ;;  %v1922_v42 = vld [vmem:[%s2061_s3] ss:$0 sm:$0xff]  ;;  %s1251_s3 = sshll.u32 %s1876_s2, 4  ;;  %s1252_s3 = int_to_ptr.vmem [resolvable:$true] %s1251_s3 }
  0x2b   :  { %1673 = vmatprep.subr.bf16.mxu0 %v1770_v6  ;;  %1749 = vmatprep.subr.bf16.mxu1 %v1770_v6  ;;  %s1846_s29 = scalar_lea.vmem %s1252_s3, 4096  ;;  %p1851_p11 = scmp.lt.s32.totalorder %s1252_s3, %s1252_s3 }
  0x2c   :  { %p1847_p10 = scmp.ne.s32.totalorder %s1252_s3, %s1846_s29  ;;  %p1852_p12 = scmp.lt.s32.totalorder %s1846_s29, %s1846_s29 }
  0x2e   :  { %1674 = vmatpush3.bf16.msra.mxu0 %v1770_v6  ;;  %1757 = vmatpush3.bf16.msra.mxu1 %v1770_v6  ;;  %p1853_p13 = por %p1852_p12, %p1851_p11 }
  0x2f   :  { %1675 = vmatprep.subr.bf16.mxu0 %v1771_v7  ;;  %1750 = vmatprep.subr.bf16.mxu1 %v1771_v7 }
  0x30   :  { %p1854_p0 = pnand %p1853_p13, %p1847_p10 }
  0x32   :  { %1676 = vmatpush3.bf16.msra.mxu0 %v1771_v7  ;;  %1758 = vmatpush3.bf16.msra.mxu1 %v1771_v7 }
  0x33   :  { %1677 = vmatprep.subr.bf16.mxu0 %v1772_v8  ;;  %1751 = vmatprep.subr.bf16.mxu1 %v1772_v8 }
  0x36   :  { %1678 = vmatpush3.bf16.msra.mxu0 %v1772_v8  ;;  %1759 = vmatpush3.bf16.msra.mxu1 %v1772_v8 }
  0x37   :  { %1679 = vmatprep.subr.bf16.mxu0 %v1773_v9  ;;  %1752 = vmatprep.subr.bf16.mxu1 %v1773_v9 }
  0x3a   :  { %1680 = vmatpush3.bf16.msra.mxu0 %v1773_v9  ;;  %1760 = vmatpush3.bf16.msra.mxu1 %v1773_v9 }
  0x3d   :  { %1682 = vmatmul.mubr.bf16.vlgmr.msra.gmra.mxu0 %v1776_v10  ;;  %1714 = vmatmul.mubr.bf16.vlgmr.msra.gmra.mxu1 %v1777_v11 }
  0x3e   :  { %1685 = vmatprep.mubr.bf16.mxu0 %v1778_v12  ;;  %1717 = vmatprep.mubr.bf16.mxu1 %v1779_v13 }
  0x45   :  { %1686 = vmatmul.mubr.bf16.gmra.mxu0 %v1780_v14  ;;  %1718 = vmatmul.mubr.bf16.gmra.mxu1 %v1781_v15 }
  0x46   :  { %1689 = vmatprep.mubr.bf16.mxu0 %v1782_v16  ;;  %1721 = vmatprep.mubr.bf16.mxu1 %v1783_v17 }
  0x4d   :  { %1690 = vmatmul.mubr.bf16.gmra.mxu0 %v1784_v18  ;;  %1722 = vmatmul.mubr.bf16.gmra.mxu1 %v1785_v19 }
  0x4e   :  { %1693 = vmatprep.mubr.bf16.mxu0 %v1786_v20  ;;  %1725 = vmatprep.mubr.bf16.mxu1 %v1787_v21 }
  0x55   :  { %1694 = vmatmul.mubr.bf16.gmra.mxu0 %v1788_v22  ;;  %1726 = vmatmul.mubr.bf16.gmra.mxu1 %v1789_v23 }
  0x56   :  { %1697 = vmatprep.mubr.bf16.mxu0 %v1790_v24  ;;  %1729 = vmatprep.mubr.bf16.mxu1 %v1791_v25 }
  0x5d   :  { %1698 = vmatmul.mubr.bf16.gmra.mxu0 %v1792_v26  ;;  %1730 = vmatmul.mubr.bf16.gmra.mxu1 %v1793_v27 }
  0x5e   :  { %1701 = vmatprep.mubr.bf16.mxu0 %v1794_v28  ;;  %1733 = vmatprep.mubr.bf16.mxu1 %v1795_v29 }
  0x65   :  { %1702 = vmatmul.mubr.bf16.gmra.mxu0 %v1796_v30  ;;  %1734 = vmatmul.mubr.bf16.gmra.mxu1 %v1797_v31 }
  0x66   :  { %1705 = vmatprep.mubr.bf16.mxu0 %v1798_v32  ;;  %1737 = vmatprep.mubr.bf16.mxu1 %v1799_v33 }
  0x6d   :  { %1706 = vmatmul.mubr.bf16.gmra.mxu0 %v1800_v34  ;;  %1738 = vmatmul.mubr.bf16.gmra.mxu1 %v1801_v35 }
  0x6e   :  { %1709 = vmatprep.mubr.bf16.mxu0 %v1802_v36  ;;  %1741 = vmatprep.mubr.bf16.mxu1 %v1803_v37 }
  0x75   :  { %1710 = vmatmul.mubr.bf16.gmra.mxu0 %v1804_v38  ;;  %1742 = vmatmul.mubr.bf16.gmra.mxu1 %v1805_v39 }
  0xfd   :  { %v1683_v41 = vpop.f32.mrf.mxu0  ;;  %v1715_v43 = vpop.f32.mrf.mxu1 }
  0xfe   :  { %v665_v44 = vmul.f32 %v1683_v41, %v1917_v40  ;;  %v697_v45 = vmul.f32 %v1715_v43, %v1917_v40 }
  0xff   :  { %v401_v46 = vpop.f32.mrf.mxu0  ;;  %v529_v47 = vpop.f32.mrf.mxu1 }
 0x100   :  { %v736_v48 = vadd.f32 %v1922_v42, %v665_v44  ;;  %v768_v49 = vadd.f32 %v1922_v42, %v697_v45  ;;  %v663_v50 = vmul.f32 %v1917_v40, %v401_v46  ;;  %v695_v51 = vmul.f32 %v1917_v40, %v529_v47 }
 0x101   :  { %v1684_v52 = vpop.f32.mrf.mxu0  ;;  %v1716_v53 = vpop.f32.mrf.mxu1 }
 0x102   :  { %v800_v54 = vmax.f32 %v736_v48, 0.0  ;;  %v832_v55 = vmax.f32 %v768_v49, 0.0  ;;  %v734_v56 = vadd.f32 %v1922_v42, %v663_v50  ;;  %v766_v57 = vadd.f32 %v1922_v42, %v695_v51 }
 0x103   :  { %v666_v58 = vmul.f32 %v1684_v52, %v1917_v40  ;;  %v698_v59 = vmul.f32 %v1716_v53, %v1917_v40  ;;  %v404_v60 = vpop.f32.mrf.mxu0  ;;  %v532_v61 = vpop.f32.mrf.mxu1 }
 0x104   :  { %v864_v62 = vmin.f32 %v800_v54, 6.0  ;;  %v896_v63 = vmin.f32 %v832_v55, 6.0  ;;  %v664_v2 = vmul.f32 %v1917_v40, %v404_v60  ;;  %v696_v3 = vmul.f32 %v1917_v40, %v532_v61 }
 0x105   :  { %v737_v0 = vadd.f32 %v1922_v42, %v666_v58  ;;  %v769_v1 = vadd.f32 %v1922_v42, %v698_v59  ;;  %v1687_v4 = vpop.f32.mrf.mxu0  ;;  %v1719_v5 = vpop.f32.mrf.mxu1  ;;  %v798_v6 = vmax.f32 %v734_v56, 0.0  ;;  %v830_v7 = vmax.f32 %v766_v57, 0.0 }
 0x106   :  { %v669_v8 = vmul.f32 %v1687_v4, %v1917_v40  ;;  %v701_v9 = vmul.f32 %v1719_v5, %v1917_v40  ;;  %v735_v12 = vadd.f32 %v1922_v42, %v664_v2  ;;  %v767_v13 = vadd.f32 %v1922_v42, %v696_v3 }
 0x107   :  { %v801_v10 = vmax.f32 %v737_v0, 0.0  ;;  %v833_v11 = vmax.f32 %v769_v1, 0.0  ;;  %v417_v14 = vpop.f32.mrf.mxu0  ;;  %v545_v15 = vpop.f32.mrf.mxu1  ;;  %v862_v26 = vmin.f32 %v798_v6, 6.0  ;;  %v894_v27 = vmin.f32 %v830_v7, 6.0 }
 0x108   :  { %v740_v16 = vadd.f32 %v1922_v42, %v669_v8  ;;  %v772_v17 = vadd.f32 %v1922_v42, %v701_v9  ;;  %v667_v18 = vmul.f32 %v1917_v40, %v417_v14  ;;  %v699_v19 = vmul.f32 %v1917_v40, %v545_v15 }
 0x109   :  { %v865_v20 = vmin.f32 %v801_v10, 6.0  ;;  %v897_v21 = vmin.f32 %v833_v11, 6.0  ;;  %v799_v22 = vmax.f32 %v735_v12, 0.0  ;;  %v831_v23 = vmax.f32 %v767_v13, 0.0  ;;  %v1688_v24 = vpop.f32.mrf.mxu0  ;;  %v1720_v25 = vpop.f32.mrf.mxu1 }
 0x10a   :  { %v738_v28 = vadd.f32 %v1922_v42, %v667_v18  ;;  %v770_v29 = vadd.f32 %v1922_v42, %v699_v19  ;;  %v804_v36 = vmax.f32 %v740_v16, 0.0  ;;  %v836_v37 = vmax.f32 %v772_v17, 0.0 }
 0x10b   :  { %v1442_v30 = vpack.c.bf16 %v865_v20, %v864_v62  ;;  %v1522_v31 = vpack.c.bf16 %v897_v21, %v896_v63  ;;  %v863_v32 = vmin.f32 %v799_v22, 6.0  ;;  %v895_v33 = vmin.f32 %v831_v23, 6.0  ;;  %v420_v34 = vpop.f32.mrf.mxu0  ;;  %v548_v35 = vpop.f32.mrf.mxu1 }
 0x10c   :  { %v670_v41 = vmul.f32 %v1688_v24, %v1917_v40  ;;  %v702_v43 = vmul.f32 %v1720_v25, %v1917_v40  ;;  %v802_v46 = vmax.f32 %v738_v28, 0.0  ;;  %v834_v47 = vmax.f32 %v770_v29, 0.0 }
 0x10d   :  { %1594 = vst [vmem:[#allocation7 + $0x8] sm:$0xff] %v1442_v30   ;;  %1610 = vst [vmem:[#allocation7 + $0x88] sm:$0xff] %v1522_v31   ;;  %v1437_v38 = vpack.c.bf16 %v863_v32, %v862_v26  ;;  %v1517_v39 = vpack.c.bf16 %v895_v33, %v894_v27  ;;  %v1691_v44 = vpop.f32.mrf.mxu0  ;;  %v1723_v45 = vpop.f32.mrf.mxu1  ;;  %v668_v48 = vmul.f32 %v1917_v40, %v420_v34  ;;  %v868_v6 = vmin.f32 %v804_v36, 6.0 }
 0x10e   :  { %v700_v49 = vmul.f32 %v1917_v40, %v548_v35  ;;  %v741_v50 = vadd.f32 %v1922_v42, %v670_v41  ;;  %v773_v51 = vadd.f32 %v1922_v42, %v702_v43  ;;  %v673_v52 = vmul.f32 %v1691_v44, %v1917_v40 }
 0x10f   :  { %1438 = vst [vmem:[#allocation7] sm:$0xff] %v1437_v38   ;;  %1609 = vst [vmem:[#allocation7 + $0x80] sm:$0xff] %v1517_v39   ;;  %v705_v53 = vmul.f32 %v1723_v45, %v1917_v40  ;;  %v433_v54 = vpop.f32.mrf.mxu0  ;;  %v561_v55 = vpop.f32.mrf.mxu1  ;;  %v739_v56 = vadd.f32 %v1922_v42, %v668_v48  ;;  %v900_v7 = vmin.f32 %v836_v37, 6.0  ;;  %v866_v12 = vmin.f32 %v802_v46, 6.0 }
 0x110   :  { %v771_v57 = vadd.f32 %v1922_v42, %v700_v49  ;;  %v671_v58 = vmul.f32 %v1917_v40, %v433_v54  ;;  %v703_v59 = vmul.f32 %v1917_v40, %v561_v55  ;;  %v805_v60 = vmax.f32 %v741_v50, 0.0 }
 0x111   :  { %v837_v61 = vmax.f32 %v773_v51, 0.0  ;;  %v744_v62 = vadd.f32 %v1922_v42, %v673_v52  ;;  %v776_v63 = vadd.f32 %v1922_v42, %v705_v53  ;;  %v1692_v0 = vpop.f32.mrf.mxu0  ;;  %v1724_v1 = vpop.f32.mrf.mxu1  ;;  %v803_v2 = vmax.f32 %v739_v56, 0.0 }
 0x112   :  { %v835_v3 = vmax.f32 %v771_v57, 0.0  ;;  %v742_v4 = vadd.f32 %v1922_v42, %v671_v58  ;;  %v774_v5 = vadd.f32 %v1922_v42, %v703_v59  ;;  %v869_v8 = vmin.f32 %v805_v60, 6.0 }
 0x113   :  { %v901_v9 = vmin.f32 %v837_v61, 6.0  ;;  %v436_v10 = vpop.f32.mrf.mxu0  ;;  %v564_v11 = vpop.f32.mrf.mxu1  ;;  %v898_v13 = vmin.f32 %v834_v47, 6.0  ;;  %v867_v14 = vmin.f32 %v803_v2, 6.0  ;;  %v808_v18 = vmax.f32 %v744_v62, 0.0 }
 0x114   :  { %v899_v15 = vmin.f32 %v835_v3, 6.0  ;;  %v1452_v16 = vpack.c.bf16 %v869_v8, %v868_v6  ;;  %v840_v19 = vmax.f32 %v776_v63, 0.0  ;;  %v806_v24 = vmax.f32 %v742_v4, 0.0 }
 0x115   :  { %v1532_v17 = vpack.c.bf16 %v901_v9, %v900_v7  ;;  %v1695_v20 = vpop.f32.mrf.mxu0  ;;  %v1727_v21 = vpop.f32.mrf.mxu1  ;;  %v1447_v22 = vpack.c.bf16 %v867_v14, %v866_v12  ;;  %v838_v25 = vmax.f32 %v774_v5, 0.0  ;;  %v674_v26 = vmul.f32 %v1692_v0, %v1917_v40 }
 0x116   :  { %v1527_v23 = vpack.c.bf16 %v899_v15, %v898_v13  ;;  %1596 = vst [vmem:[#allocation7 + $0x18] sm:$0xff] %v1452_v16   ;;  %v706_v27 = vmul.f32 %v1724_v1, %v1917_v40  ;;  %v672_v28 = vmul.f32 %v1917_v40, %v436_v10  ;;  %v704_v29 = vmul.f32 %v1917_v40, %v564_v11 }
 0x117   :  { %1612 = vst [vmem:[#allocation7 + $0x98] sm:$0xff] %v1532_v17   ;;  %v449_v30 = vpop.f32.mrf.mxu0  ;;  %v577_v31 = vpop.f32.mrf.mxu1  ;;  %1595 = vst [vmem:[#allocation7 + $0x10] sm:$0xff] %v1447_v22   ;;  %v677_v32 = vmul.f32 %v1695_v20, %v1917_v40  ;;  %v709_v33 = vmul.f32 %v1727_v21, %v1917_v40  ;;  %v745_v36 = vadd.f32 %v1922_v42, %v674_v26  ;;  %v872_v54 = vmin.f32 %v808_v18, 6.0 }
 0x118   :  { %1611 = vst [vmem:[#allocation7 + $0x90] sm:$0xff] %v1527_v23   ;;  %v675_v34 = vmul.f32 %v1917_v40, %v449_v30  ;;  %v707_v35 = vmul.f32 %v1917_v40, %v577_v31  ;;  %v777_v37 = vadd.f32 %v1922_v42, %v706_v27  ;;  %v743_v38 = vadd.f32 %v1922_v42, %v672_v28 }
 0x119   :  { %v775_v39 = vadd.f32 %v1922_v42, %v704_v29  ;;  %v1696_v41 = vpop.f32.mrf.mxu0  ;;  %v1728_v43 = vpop.f32.mrf.mxu1  ;;  %v748_v44 = vadd.f32 %v1922_v42, %v677_v32  ;;  %v780_v45 = vadd.f32 %v1922_v42, %v709_v33  ;;  %v809_v48 = vmax.f32 %v745_v36, 0.0 }
 0x11a   :  { %v746_v46 = vadd.f32 %v1922_v42, %v675_v34  ;;  %v778_v47 = vadd.f32 %v1922_v42, %v707_v35  ;;  %v841_v49 = vmax.f32 %v777_v37, 0.0  ;;  %v807_v50 = vmax.f32 %v743_v38, 0.0 }
 0x11b   :  { %v839_v51 = vmax.f32 %v775_v39, 0.0  ;;  %v452_v52 = vpop.f32.mrf.mxu0  ;;  %v580_v53 = vpop.f32.mrf.mxu1  ;;  %v904_v55 = vmin.f32 %v840_v19, 6.0  ;;  %v870_v56 = vmin.f32 %v806_v24, 6.0  ;;  %v902_v57 = vmin.f32 %v838_v25, 6.0 }
 0x11c   :  { %v873_v58 = vmin.f32 %v809_v48, 6.0  ;;  %v905_v59 = vmin.f32 %v841_v49, 6.0  ;;  %v871_v60 = vmin.f32 %v807_v50, 6.0  ;;  %v812_v0 = vmax.f32 %v748_v44, 0.0 }
 0x11d   :  { %v903_v61 = vmin.f32 %v839_v51, 6.0  ;;  %v1699_v62 = vpop.f32.mrf.mxu0  ;;  %v1731_v63 = vpop.f32.mrf.mxu1  ;;  %v844_v1 = vmax.f32 %v780_v45, 0.0  ;;  %v810_v2 = vmax.f32 %v746_v46, 0.0  ;;  %v842_v3 = vmax.f32 %v778_v47, 0.0 }
 0x11e   :  { %v1462_v4 = vpack.c.bf16 %v873_v58, %v872_v54  ;;  %v1542_v5 = vpack.c.bf16 %v905_v59, %v904_v55  ;;  %v1457_v6 = vpack.c.bf16 %v871_v60, %v870_v56  ;;  %v678_v10 = vmul.f32 %v1696_v41, %v1917_v40 }
 0x11f   :  { %v1537_v7 = vpack.c.bf16 %v903_v61, %v902_v57  ;;  %v465_v8 = vpop.f32.mrf.mxu0  ;;  %v593_v9 = vpop.f32.mrf.mxu1  ;;  %v710_v11 = vmul.f32 %v1728_v43, %v1917_v40  ;;  %v676_v12 = vmul.f32 %v1917_v40, %v452_v52  ;;  %v708_v13 = vmul.f32 %v1917_v40, %v580_v53 }
 0x120   :  { %1598 = vst [vmem:[#allocation7 + $0x28] sm:$0xff] %v1462_v4   ;;  %1614 = vst [vmem:[#allocation7 + $0xa8] sm:$0xff] %v1542_v5   ;;  %v681_v14 = vmul.f32 %v1699_v62, %v1917_v40  ;;  %v713_v15 = vmul.f32 %v1731_v63, %v1917_v40  ;;  %v679_v16 = vmul.f32 %v1917_v40, %v465_v8  ;;  %v876_v34 = vmin.f32 %v812_v0, 6.0 }
 0x121   :  { %1597 = vst [vmem:[#allocation7 + $0x20] sm:$0xff] %v1457_v6   ;;  %1613 = vst [vmem:[#allocation7 + $0xa0] sm:$0xff] %v1537_v7   ;;  %v711_v17 = vmul.f32 %v1917_v40, %v593_v9  ;;  %v1700_v18 = vpop.f32.mrf.mxu0  ;;  %v1732_v19 = vpop.f32.mrf.mxu1  ;;  %v749_v20 = vadd.f32 %v1922_v42, %v678_v10  ;;  %v781_v21 = vadd.f32 %v1922_v42, %v710_v11  ;;  %v908_v35 = vmin.f32 %v844_v1, 6.0 }
 0x122   :  { %v747_v22 = vadd.f32 %v1922_v42, %v676_v12  ;;  %v779_v23 = vadd.f32 %v1922_v42, %v708_v13  ;;  %v752_v24 = vadd.f32 %v1922_v42, %v681_v14  ;;  %v784_v25 = vadd.f32 %v1922_v42, %v713_v15 }
 0x123   :  { %v750_v26 = vadd.f32 %v1922_v42, %v679_v16  ;;  %v782_v27 = vadd.f32 %v1922_v42, %v711_v17  ;;  %v468_v28 = vpop.f32.mrf.mxu0  ;;  %v596_v29 = vpop.f32.mrf.mxu1  ;;  %v813_v30 = vmax.f32 %v749_v20, 0.0  ;;  %v845_v31 = vmax.f32 %v781_v21, 0.0 }
 0x124   :  { %v811_v32 = vmax.f32 %v747_v22, 0.0  ;;  %v843_v33 = vmax.f32 %v779_v23, 0.0  ;;  %v874_v36 = vmin.f32 %v810_v2, 6.0  ;;  %v906_v37 = vmin.f32 %v842_v3, 6.0 }
 0x125   :  { %v1703_v38 = vpop.f32.mrf.mxu0  ;;  %v1735_v39 = vpop.f32.mrf.mxu1  ;;  %v877_v41 = vmin.f32 %v813_v30, 6.0  ;;  %v909_v43 = vmin.f32 %v845_v31, 6.0  ;;  %v816_v46 = vmax.f32 %v752_v24, 0.0  ;;  %v848_v47 = vmax.f32 %v784_v25, 0.0 }
 0x126   :  { %v875_v44 = vmin.f32 %v811_v32, 6.0  ;;  %v907_v45 = vmin.f32 %v843_v33, 6.0  ;;  %v814_v48 = vmax.f32 %v750_v26, 0.0  ;;  %v846_v49 = vmax.f32 %v782_v27, 0.0 }
 0x127   :  { %v481_v50 = vpop.f32.mrf.mxu0  ;;  %v609_v51 = vpop.f32.mrf.mxu1  ;;  %v1472_v52 = vpack.c.bf16 %v877_v41, %v876_v34  ;;  %v1552_v53 = vpack.c.bf16 %v909_v43, %v908_v35  ;;  %v682_v56 = vmul.f32 %v1700_v18, %v1917_v40  ;;  %v714_v57 = vmul.f32 %v1732_v19, %v1917_v40 }
 0x128   :  { %v1467_v54 = vpack.c.bf16 %v875_v44, %v874_v36  ;;  %v1547_v55 = vpack.c.bf16 %v907_v45, %v906_v37  ;;  %v680_v58 = vmul.f32 %v1917_v40, %v468_v28  ;;  %v712_v59 = vmul.f32 %v1917_v40, %v596_v29 }
 0x129   :  { %v1704_v60 = vpop.f32.mrf.mxu0  ;;  %v1736_v61 = vpop.f32.mrf.mxu1  ;;  %1600 = vst [vmem:[#allocation7 + $0x38] sm:$0xff] %v1472_v52   ;;  %1616 = vst [vmem:[#allocation7 + $0xb8] sm:$0xff] %v1552_v53   ;;  %v685_v62 = vmul.f32 %v1703_v38, %v1917_v40  ;;  %v717_v63 = vmul.f32 %v1735_v39, %v1917_v40  ;;  %v683_v0 = vmul.f32 %v1917_v40, %v481_v50  ;;  %v880_v18 = vmin.f32 %v816_v46, 6.0 }
 0x12a   :  { %1599 = vst [vmem:[#allocation7 + $0x30] sm:$0xff] %v1467_v54   ;;  %1615 = vst [vmem:[#allocation7 + $0xb0] sm:$0xff] %v1547_v55   ;;  %v715_v1 = vmul.f32 %v1917_v40, %v609_v51  ;;  %v753_v2 = vadd.f32 %v1922_v42, %v682_v56  ;;  %v785_v3 = vadd.f32 %v1922_v42, %v714_v57  ;;  %v912_v19 = vmin.f32 %v848_v47, 6.0 }
 0x12b   :  { %v751_v4 = vadd.f32 %v1922_v42, %v680_v58  ;;  %v783_v5 = vadd.f32 %v1922_v42, %v712_v59  ;;  %v484_v6 = vpop.f32.mrf.mxu0  ;;  %v612_v7 = vpop.f32.mrf.mxu1  ;;  %v756_v8 = vadd.f32 %v1922_v42, %v685_v62  ;;  %v788_v9 = vadd.f32 %v1922_v42, %v717_v63 }
 0x12c   :  { %v754_v10 = vadd.f32 %v1922_v42, %v683_v0  ;;  %v786_v11 = vadd.f32 %v1922_v42, %v715_v1  ;;  %v817_v12 = vmax.f32 %v753_v2, 0.0  ;;  %v849_v13 = vmax.f32 %v785_v3, 0.0 }
 0x12d   :  { %v815_v14 = vmax.f32 %v751_v4, 0.0  ;;  %v847_v15 = vmax.f32 %v783_v5, 0.0  ;;  %v1707_v16 = vpop.f32.mrf.mxu0  ;;  %v1739_v17 = vpop.f32.mrf.mxu1  ;;  %v878_v20 = vmin.f32 %v814_v48, 6.0  ;;  %v910_v21 = vmin.f32 %v846_v49, 6.0 }
 0x12e   :  { %v881_v22 = vmin.f32 %v817_v12, 6.0  ;;  %v913_v23 = vmin.f32 %v849_v13, 6.0  ;;  %v820_v28 = vmax.f32 %v756_v8, 0.0  ;;  %v852_v29 = vmax.f32 %v788_v9, 0.0 }
 0x12f   :  { %v879_v24 = vmin.f32 %v815_v14, 6.0  ;;  %v911_v25 = vmin.f32 %v847_v15, 6.0  ;;  %v497_v26 = vpop.f32.mrf.mxu0  ;;  %v625_v27 = vpop.f32.mrf.mxu1  ;;  %v818_v30 = vmax.f32 %v754_v10, 0.0  ;;  %v850_v31 = vmax.f32 %v786_v11, 0.0 }
 0x130   :  { %v1482_v32 = vpack.c.bf16 %v881_v22, %v880_v18  ;;  %v1562_v33 = vpack.c.bf16 %v913_v23, %v912_v19  ;;  %v686_v38 = vmul.f32 %v1704_v60, %v1917_v40  ;;  %v718_v39 = vmul.f32 %v1736_v61, %v1917_v40 }
 0x131   :  { %v1477_v34 = vpack.c.bf16 %v879_v24, %v878_v20  ;;  %v1557_v35 = vpack.c.bf16 %v911_v25, %v910_v21  ;;  %v1708_v36 = vpop.f32.mrf.mxu0  ;;  %v1740_v37 = vpop.f32.mrf.mxu1  ;;  %v684_v41 = vmul.f32 %v1917_v40, %v484_v6  ;;  %v716_v43 = vmul.f32 %v1917_v40, %v612_v7 }
 0x132   :  { %1602 = vst [vmem:[#allocation7 + $0x48] sm:$0xff] %v1482_v32   ;;  %1618 = vst [vmem:[#allocation7 + $0xc8] sm:$0xff] %v1562_v33   ;;  %v689_v44 = vmul.f32 %v1707_v16, %v1917_v40  ;;  %v721_v45 = vmul.f32 %v1739_v17, %v1917_v40  ;;  %v687_v46 = vmul.f32 %v1917_v40, %v497_v26  ;;  %v884_v0 = vmin.f32 %v820_v28, 6.0 }
 0x133   :  { %1601 = vst [vmem:[#allocation7 + $0x40] sm:$0xff] %v1477_v34   ;;  %1617 = vst [vmem:[#allocation7 + $0xc0] sm:$0xff] %v1557_v35   ;;  %v719_v47 = vmul.f32 %v1917_v40, %v625_v27  ;;  %v500_v48 = vpop.f32.mrf.mxu0  ;;  %v628_v49 = vpop.f32.mrf.mxu1  ;;  %v757_v50 = vadd.f32 %v1922_v42, %v686_v38  ;;  %v789_v51 = vadd.f32 %v1922_v42, %v718_v39  ;;  %v916_v1 = vmin.f32 %v852_v29, 6.0 }
 0x134   :  { %v755_v52 = vadd.f32 %v1922_v42, %v684_v41  ;;  %v787_v53 = vadd.f32 %v1922_v42, %v716_v43  ;;  %v760_v54 = vadd.f32 %v1922_v42, %v689_v44  ;;  %v792_v55 = vadd.f32 %v1922_v42, %v721_v45 }
 0x135   :  { %v758_v56 = vadd.f32 %v1922_v42, %v687_v46  ;;  %v790_v57 = vadd.f32 %v1922_v42, %v719_v47  ;;  %v1711_v58 = vpop.f32.mrf.mxu0  ;;  %v1743_v59 = vpop.f32.mrf.mxu1  ;;  %v821_v60 = vmax.f32 %v757_v50, 0.0  ;;  %v853_v61 = vmax.f32 %v789_v51, 0.0 }
 0x136   :  { %v819_v62 = vmax.f32 %v755_v52, 0.0  ;;  %v851_v63 = vmax.f32 %v787_v53, 0.0  ;;  %v882_v2 = vmin.f32 %v818_v30, 6.0  ;;  %v914_v3 = vmin.f32 %v850_v31, 6.0 }
 0x137   :  { %v885_v4 = vmin.f32 %v821_v60, 6.0  ;;  %v917_v5 = vmin.f32 %v853_v61, 6.0  ;;  %v824_v8 = vmax.f32 %v760_v54, 0.0  ;;  %v856_v9 = vmax.f32 %v792_v55, 0.0  ;;  %v513_v12 = vpop.f32.mrf.mxu0  ;;  %v641_v13 = vpop.f32.mrf.mxu1 }
 0x138   :  { %v883_v6 = vmin.f32 %v819_v62, 6.0  ;;  %v915_v7 = vmin.f32 %v851_v63, 6.0  ;;  %v822_v10 = vmax.f32 %v758_v56, 0.0  ;;  %v854_v11 = vmax.f32 %v790_v57, 0.0 }
 0x139   :  { %v1492_v14 = vpack.c.bf16 %v885_v4, %v884_v0  ;;  %v1572_v15 = vpack.c.bf16 %v917_v5, %v916_v1  ;;  %v690_v18 = vmul.f32 %v1708_v36, %v1917_v40  ;;  %v722_v19 = vmul.f32 %v1740_v37, %v1917_v40  ;;  %v1712_v30 = vpop.f32.mrf.mxu0  ;;  %v1744_v31 = vpop.f32.mrf.mxu1 }
 0x13a   :  { %v1487_v16 = vpack.c.bf16 %v883_v6, %v882_v2  ;;  %v1567_v17 = vpack.c.bf16 %v915_v7, %v914_v3  ;;  %v688_v20 = vmul.f32 %v1917_v40, %v500_v48  ;;  %v720_v21 = vmul.f32 %v1917_v40, %v628_v49 }
 0x13b   :  { %1604 = vst [vmem:[#allocation7 + $0x58] sm:$0xff] %v1492_v14   ;;  %1620 = vst [vmem:[#allocation7 + $0xd8] sm:$0xff] %v1572_v15   ;;  %v693_v22 = vmul.f32 %v1711_v58, %v1917_v40  ;;  %v725_v23 = vmul.f32 %v1743_v59, %v1917_v40  ;;  %v691_v24 = vmul.f32 %v1917_v40, %v513_v12  ;;  %v888_v32 = vmin.f32 %v824_v8, 6.0  ;;  %v516_v50 = vpop.f32.mrf.mxu0  ;;  %v644_v51 = vpop.f32.mrf.mxu1 }
 0x13c   :  { %1603 = vst [vmem:[#allocation7 + $0x50] sm:$0xff] %v1487_v16   ;;  %1619 = vst [vmem:[#allocation7 + $0xd0] sm:$0xff] %v1567_v17   ;;  %v723_v25 = vmul.f32 %v1917_v40, %v641_v13  ;;  %v761_v26 = vadd.f32 %v1922_v42, %v690_v18  ;;  %v793_v27 = vadd.f32 %v1922_v42, %v722_v19  ;;  %v920_v33 = vmin.f32 %v856_v9, 6.0 }
 0x13d   :  { %v759_v28 = vadd.f32 %v1922_v42, %v688_v20  ;;  %v791_v29 = vadd.f32 %v1922_v42, %v720_v21  ;;  %v886_v34 = vmin.f32 %v822_v10, 6.0  ;;  %v918_v35 = vmin.f32 %v854_v11, 6.0 }
 0x13e   :  { %v825_v36 = vmax.f32 %v761_v26, 0.0  ;;  %v857_v37 = vmax.f32 %v793_v27, 0.0  ;;  %v764_v41 = vadd.f32 %v1922_v42, %v693_v22  ;;  %v796_v43 = vadd.f32 %v1922_v42, %v725_v23 }
 0x13f   :  { %v823_v38 = vmax.f32 %v759_v28, 0.0  ;;  %v855_v39 = vmax.f32 %v791_v29, 0.0  ;;  %v762_v44 = vadd.f32 %v1922_v42, %v691_v24  ;;  %v794_v45 = vadd.f32 %v1922_v42, %v723_v25 }
 0x140   :  { %v889_v46 = vmin.f32 %v825_v36, 6.0  ;;  %v921_v47 = vmin.f32 %v857_v37, 6.0  ;;  %v694_v56 = vmul.f32 %v1712_v30, %v1917_v40  ;;  %v726_v57 = vmul.f32 %v1744_v31, %v1917_v40 }
 0x141   :  { %v887_v48 = vmin.f32 %v823_v38, 6.0  ;;  %v919_v49 = vmin.f32 %v855_v39, 6.0  ;;  %v692_v58 = vmul.f32 %v1917_v40, %v516_v50  ;;  %v724_v59 = vmul.f32 %v1917_v40, %v644_v51 }
 0x142   :  { %v1502_v52 = vpack.c.bf16 %v889_v46, %v888_v32  ;;  %v1582_v53 = vpack.c.bf16 %v921_v47, %v920_v33  ;;  %v828_v60 = vmax.f32 %v764_v41, 0.0  ;;  %v860_v61 = vmax.f32 %v796_v43, 0.0 }
 0x143   :  { %v1497_v54 = vpack.c.bf16 %v887_v48, %v886_v34  ;;  %v1577_v55 = vpack.c.bf16 %v919_v49, %v918_v35  ;;  %v826_v62 = vmax.f32 %v762_v44, 0.0  ;;  %v858_v63 = vmax.f32 %v794_v45, 0.0 }
 0x144   :  { %1606 = vst [vmem:[#allocation7 + $0x68] sm:$0xff] %v1502_v52   ;;  %1622 = vst [vmem:[#allocation7 + $0xe8] sm:$0xff] %v1582_v53   ;;  %v765_v0 = vadd.f32 %v1922_v42, %v694_v56  ;;  %v797_v1 = vadd.f32 %v1922_v42, %v726_v57  ;;  %v763_v2 = vadd.f32 %v1922_v42, %v692_v58  ;;  %v892_v7 = vmin.f32 %v828_v60, 6.0 }
 0x145   :  { %1605 = vst [vmem:[#allocation7 + $0x60] sm:$0xff] %v1497_v54   ;;  %1621 = vst [vmem:[#allocation7 + $0xe0] sm:$0xff] %v1577_v55   ;;  %v795_v3 = vadd.f32 %v1922_v42, %v724_v59  ;;  %v924_v8 = vmin.f32 %v860_v61, 6.0  ;;  %v890_v9 = vmin.f32 %v826_v62, 6.0  ;;  %v922_v10 = vmin.f32 %v858_v63, 6.0 }
 0x146   :  { %v829_v4 = vmax.f32 %v765_v0, 0.0  ;;  %v861_v5 = vmax.f32 %v797_v1, 0.0  ;;  %v827_v6 = vmax.f32 %v763_v2, 0.0 }
 0x147   :  { %v859_v40 = vmax.f32 %v795_v3, 0.0 }
 0x148   :  { %v893_v11 = vmin.f32 %v829_v4, 6.0  ;;  %v925_v12 = vmin.f32 %v861_v5, 6.0  ;;  %v891_v13 = vmin.f32 %v827_v6, 6.0 }
 0x149   :  { %v923_v14 = vmin.f32 %v859_v40, 6.0 }
 0x14a   :  { %v1512_v15 = vpack.c.bf16 %v893_v11, %v892_v7  ;;  %v1592_v16 = vpack.c.bf16 %v925_v12, %v924_v8  ;;  %v1507_v17 = vpack.c.bf16 %v891_v13, %v890_v9 }
 0x14b   :  { %v1587_v18 = vpack.c.bf16 %v923_v14, %v922_v10 }
 0x14c   :  { %1608 = vst [vmem:[#allocation7 + $0x78] sm:$0xff] %v1512_v15   ;;  %1624 = vst [vmem:[#allocation7 + $0xf8] sm:$0xff] %v1592_v16  }
 0x14d   :  { %1607 = vst [vmem:[#allocation7 + $0x70] sm:$0xff] %v1507_v17   ;;  %1623 = vst [vmem:[#allocation7 + $0xf0] sm:$0xff] %v1587_v18  }
 0x14e   :  { %1857 = shalt.err (!%p1854_p0)
}
 0x14f   :  { %1257 = dma.vmem_to_hbm [thread:$0]  %s1252_s3, 4096, %s2062_s4, [#allocation4], %s1873_s18, %s1873_s18, %s1874_s19  }
 0x150   :  { %1870 = dma.done.wait [#allocation4], 4096  }
 0x151   :  { %1871 = vsyncadd [#allocation4], 4294963200 }
 0x152   :  { %1261 = vsyncpa [#allocation3], 1 }
 0x153   :  { %1262 = vsyncpa [#allocation6], 1 }
 0x154   :  { %1263 = vsyncpa [#allocation4], 1 }

</bundles_post_ra>
